<compile_context>
chip_gen: v6e
topology: v6e:2x2x1
jax: 0.10.0
libtpu: 0.0.40
codegen_flags: <defaults>
</compile_context>

<pallas_src>
import functools

import jax
import jax.numpy as jnp
from jax.experimental import pallas as pl
from jax.experimental.pallas import tpu as pltpu

_EPS = 1e-5            # torch.nn.LayerNorm default
_LANES = 128
_MIN_PARALLEL_BLOCKS = 8   # keep both v7x TensorCores fed (harmless on 1-TC chips)


# ----------------------------- sizing helpers ---------------------------------


def _vmem_limit_bytes():
    """Explicit scoped-VMEM limit: ~3/4 of physical VMEM (96 MiB on v5e/v6e's
    128 MiB, 48 MiB on v7x's 64 MiB) instead of the 16/32 MiB scoped defaults."""
    cap = 64 * 1024 * 1024
    try:
        info = pltpu.get_tpu_info()
        cap_attr = getattr(info, "vmem_capacity_bytes", None)
        if cap_attr:
            cap = int(cap_attr)
    except Exception:
        pass
    return int(min(cap * 3 // 4, 96 * 1024 * 1024))


def _max_block_elems(itemsize, vmem_limit_bytes):
    """Max elements per block so that 2x double-buffered input + 2x output (native
    dtype) plus ~3 full-tile f32 temporaries (x_f32, x-mean, y) fit in half the
    VMEM limit (the other half is headroom for Mosaic internal scratch)."""
    budget = vmem_limit_bytes // 2
    bytes_per_elem = 4 * itemsize + 3 * 4
    return max(_LANES * 8, budget // bytes_per_elem)


def _sublane_multiple(itemsize):
    """Dtype-native sublane packing: 8 rows for f32, 16 for bf16, 32 for int8/fp8."""
    return max(8, 32 // max(int(itemsize), 1))


def _ensure_min_blocks(tile, extent, outer_blocks, floor, multiple):
    """Shrink `tile` (never below `floor`, staying a multiple of `multiple`) until
    outer_blocks * cdiv(extent, tile) >= _MIN_PARALLEL_BLOCKS, so v7x's two
    TensorCores both get work on `parallel` grid axes."""
    while outer_blocks * pl.cdiv(extent, tile) < _MIN_PARALLEL_BLOCKS and tile >= 2 * floor:
        tile = max(floor, ((tile // 2) // multiple) * multiple)
    return tile


# ----------------------------- kernels ----------------------------------------


def _ln_ncl_kernel(x_ref, g_ref, b_ref, o_ref):
    """LayerNorm over the channel (sublane) axis of a (1, C, tile_L) block."""
    x = x_ref[...].astype(jnp.float32)                 # (1, C, tL)
    mean = jnp.mean(x, axis=1, keepdims=True)          # (1, 1, tL)
    xc = x - mean
    var = jnp.mean(xc * xc, axis=1, keepdims=True)     # biased variance (matches torch)
    inv = jax.lax.rsqrt(var + _EPS)
    # g_ref/b_ref: (C, 1) f32, broadcast over batch-1 and L.
    y = xc * inv * g_ref[...] + b_ref[...]
    o_ref[...] = y.astype(o_ref.dtype)


def _ln_rows_kernel(x_ref, g_ref, b_ref, o_ref):
    """LayerNorm over the last (lane) axis of a (tile_rows, C) block."""
    x = x_ref[...].astype(jnp.float32)                 # (tR, C)
    mean = jnp.mean(x, axis=-1, keepdims=True)
    xc = x - mean
    var = jnp.mean(xc * xc, axis=-1, keepdims=True)
    inv = jax.lax.rsqrt(var + _EPS)
    y = xc * inv * g_ref[...] + b_ref[...]
    o_ref[...] = y.astype(o_ref.dtype)


def _ln_packed_kernel(x_ref, g_ref, b_ref, seg_ref, segt_ref, o_ref, *, inv_c):
    """LayerNorm for k=128//C original rows packed per 128-lane row.

    The per-row (length-C) mean/var become segmented lane sums, computed as
    one-hot matmuls on the MXU (exact f32 via Precision.HIGHEST); loads and
    stores are fully lane-dense (no masked vst)."""
    hp = jax.lax.Precision.HIGHEST
    x = x_ref[...].astype(jnp.float32)                 # (tR, 128)
    seg = seg_ref[...]                                 # (128, k) one-hot group membership
    seg_t = segt_ref[...]                              # (k, 128)
    mean_g = jnp.dot(x, seg, precision=hp, preferred_element_type=jnp.float32) * inv_c
    mean = jnp.dot(mean_g, seg_t, precision=hp, preferred_element_type=jnp.float32)
    xc = x - mean
    var_g = jnp.dot(xc * xc, seg, precision=hp, preferred_element_type=jnp.float32) * inv_c
    var = jnp.dot(var_g, seg_t, precision=hp, preferred_element_type=jnp.float32)
    inv = jax.lax.rsqrt(var + _EPS)
    y = xc * inv * g_ref[...] + b_ref[...]
    o_ref[...] = y.astype(o_ref.dtype)


# ----------------------------- wrappers ---------------------------------------


def _layernorm_ncl(x, gamma, beta):
    """3-D [B, C, L]: normalize over C, fully in the native NCL layout."""
    B, C, L = x.shape
    itemsize = jnp.dtype(x.dtype).itemsize
    vmem_limit = _vmem_limit_bytes()
    max_elems = _max_block_elems(itemsize, vmem_limit)

    # TODO(synk): if C is so large that a (C, 512) block cannot fit the VMEM budget,
    # a blocked-C two-pass (accumulator-in-scratch) reduction would be needed.
    if C * L <= max_elems:
        tile_l = L
    else:
        # Floor of 512 lanes keeps each of the C strided-DMA runs >= 2 KiB (f32)
        # and the stores lane-dense; partial last block along L is fine
        # (columns normalize independently).
        tile_l = min(L, max(512, (max_elems // max(C, 1)) // _LANES * _LANES))
    # TODO(synk): L < 128 leaves the output lane dim partially masked; fixing it would
    # need relaying batches into the lane dimension (extra HBM traffic).
    tile_l = _ensure_min_blocks(tile_l, L, B, floor=512, multiple=_LANES)
    grid_l = pl.cdiv(L, tile_l)

    g = gamma.astype(jnp.float32).reshape(C, 1)
    b = beta.astype(jnp.float32).reshape(C, 1)

    n = B * C * L
    cost = pl.CostEstimate(
        flops=8 * n,
        transcendentals=B * L,
        bytes_accessed=2 * n * itemsize + 2 * C * 4,
    )

    return pl.pallas_call(
        _ln_ncl_kernel,
        out_shape=jax.ShapeDtypeStruct((B, C, L), x.dtype),
        grid_spec=pltpu.PrefetchScalarGridSpec(
            num_scalar_prefetch=0,
            grid=(B, grid_l),
            in_specs=[
                pl.BlockSpec((1, C, tile_l), lambda bi, li: (bi, 0, li)),
                pl.BlockSpec((C, 1), lambda bi, li: (0, 0)),
                pl.BlockSpec((C, 1), lambda bi, li: (0, 0)),
            ],
            out_specs=pl.BlockSpec((1, C, tile_l), lambda bi, li: (bi, 0, li)),
        ),
        compiler_params=pltpu.CompilerParams(
            dimension_semantics=("parallel", "parallel"),
            vmem_limit_bytes=vmem_limit,
        ),
        cost_estimate=cost,
    )(x, g, b)


def _layernorm_rows(x, gamma, beta):
    """2-D [R, C]: normalize over the last dim (used when C >= 128 or rows don't pack)."""
    R, C = x.shape
    itemsize = jnp.dtype(x.dtype).itemsize
    sub = _sublane_multiple(itemsize)
    vmem_limit = _vmem_limit_bytes()
    max_elems = _max_block_elems(itemsize, vmem_limit)

    # TODO(synk): a single row with C*itemsize beyond the VMEM budget would need a
    # blocked-C two-pass reduction; the full C extent is assumed resident here.
    if R * C <= max_elems:
        tile_rows = R
    else:
        tile_rows = max(sub, (max_elems // C) // sub * sub)
    tile_rows = _ensure_min_blocks(tile_rows, R, 1, floor=8 * sub, multiple=sub)
    grid_r = pl.cdiv(R, tile_rows)

    g = gamma.astype(jnp.float32).reshape(1, C)
    b = beta.astype(jnp.float32).reshape(1, C)

    n = R * C
    cost = pl.CostEstimate(
        flops=8 * n,
        transcendentals=R,
        bytes_accessed=2 * n * itemsize + 2 * C * 4,
    )

    return pl.pallas_call(
        _ln_rows_kernel,
        out_shape=jax.ShapeDtypeStruct((R, C), x.dtype),
        grid_spec=pltpu.PrefetchScalarGridSpec(
            num_scalar_prefetch=0,
            grid=(grid_r,),
            in_specs=[
                pl.BlockSpec((tile_rows, C), lambda i: (i, 0)),
                pl.BlockSpec((1, C), lambda i: (0, 0)),
                pl.BlockSpec((1, C), lambda i: (0, 0)),
            ],
            out_specs=pl.BlockSpec((tile_rows, C), lambda i: (i, 0)),
        ),
        compiler_params=pltpu.CompilerParams(
            dimension_semantics=("parallel",),
            vmem_limit_bytes=vmem_limit,
        ),
        cost_estimate=cost,
    )(x, g, b)


def _layernorm_rows_packed(x, gamma, beta):
    """2-D [R, C] with C < 128, 128 % C == 0, R % (128//C) == 0: pack k = 128//C
    rows per 128-lane row via a free row-major reshape, so every load/store is
    lane-dense and HBM traffic stays at read+write of the array (no transposes)."""
    R, C = x.shape
    k = _LANES // C
    Rp = R // k
    itemsize = jnp.dtype(x.dtype).itemsize
    sub = _sublane_multiple(itemsize)
    vmem_limit = _vmem_limit_bytes()
    max_elems = _max_block_elems(itemsize, vmem_limit)

    if Rp * _LANES <= max_elems:
        tile_rows = Rp
    else:
        tile_rows = max(sub, (max_elems // _LANES) // sub * sub)
    tile_rows = _ensure_min_blocks(tile_rows, Rp, 1, floor=8 * sub, multiple=sub)
    grid_r = pl.cdiv(Rp, tile_rows)

    xp = x.reshape(Rp, _LANES)  # contiguous row-major reshape: no data movement
    g = jnp.tile(gamma.astype(jnp.float32), k).reshape(1, _LANES)
    b = jnp.tile(beta.astype(jnp.float32), k).reshape(1, _LANES)
    seg = (jnp.arange(_LANES, dtype=jnp.int32)[:, None] // C
           == jnp.arange(k, dtype=jnp.int32)[None, :]).astype(jnp.float32)   # (128, k)
    seg_t = seg.T                                                            # (k, 128)

    n = R * C
    cost = pl.CostEstimate(
        flops=8 * n + 8 * n * k,
        transcendentals=R,
        bytes_accessed=2 * n * itemsize + (2 * _LANES + 2 * _LANES * k) * 4,
    )

    yp = pl.pallas_call(
        functools.partial(_ln_packed_kernel, inv_c=1.0 / C),
        out_shape=jax.ShapeDtypeStruct((Rp, _LANES), x.dtype),
        grid_spec=pltpu.PrefetchScalarGridSpec(
            num_scalar_prefetch=0,
            grid=(grid_r,),
            in_specs=[
                pl.BlockSpec((tile_rows, _LANES), lambda i: (i, 0)),
                pl.BlockSpec((1, _LANES), lambda i: (0, 0)),
                pl.BlockSpec((1, _LANES), lambda i: (0, 0)),
                pl.BlockSpec((_LANES, k), lambda i: (0, 0)),
                pl.BlockSpec((k, _LANES), lambda i: (0, 0)),
            ],
            out_specs=pl.BlockSpec((tile_rows, _LANES), lambda i: (i, 0)),
        ),
        compiler_params=pltpu.CompilerParams(
            dimension_semantics=("parallel",),
            vmem_limit_bytes=vmem_limit,
        ),
        cost_estimate=cost,
    )(xp, g, b, seg, seg_t)
    return yp.reshape(R, C)


@jax.jit
def layer_norm_module(x, gamma, beta):
    """Matches LayerNormModule.forward:
       3-D [B, C, L] -> LayerNorm over C (native NCL layout) -> [B, C, L]
       2-D [B, C]    -> LayerNorm over C                     -> [B, C]
    """
    if x.ndim == 3:
        return _layernorm_ncl(x, gamma, beta)
    elif x.ndim == 2:
        R, C = x.shape
        k = _LANES // C if C < _LANES else 0
        if C < _LANES and _LANES % C == 0 and k > 0 and R >= k and R % k == 0:
            return _layernorm_rows_packed(x, gamma, beta)
        # TODO(synk): C < 128 with rows that don't pack evenly into 128 lanes still
        # takes the lane-masked-store path below.
        return _layernorm_rows(x, gamma, beta)
    else:
        raise ValueError("Unknown tensor shape")


# ----------------------------- reference + test --------------------------------


def _reference(x, gamma, beta):
    if x.ndim == 3:
        xt = jnp.transpose(x, (0, 2, 1))
        mean = jnp.mean(xt, axis=-1, keepdims=True)
        var = jnp.mean((xt - mean) ** 2, axis=-1, keepdims=True)
        y = (xt - mean) / jnp.sqrt(var + _EPS) * gamma + beta
        return jnp.transpose(y, (0, 2, 1))
    mean = jnp.mean(x, axis=-1, keepdims=True)
    var = jnp.mean((x - mean) ** 2, axis=-1, keepdims=True)
    return (x - mean) / jnp.sqrt(var + _EPS) * gamma + beta


if __name__ == "__main__":
    num_features = 32   # channels (normalized_shape)
    batch, length = 2, 16

    key = jax.random.PRNGKey(0)
    kx, k2, k3, k4 = jax.random.split(key, 4)

    # Deterministic, non-trivial affine params so scale/shift paths are exercised.
    gamma = jnp.ones((num_features,), jnp.float32) + 0.1 * jnp.arange(num_features, dtype=jnp.float32)
    beta = 0.01 * jnp.arange(num_features, dtype=jnp.float32)

    # 3-D path, short length: [batch, channels, length]
    x3 = jax.random.normal(kx, (batch, num_features, length), jnp.float32)
    y3 = layer_norm_module(x3, gamma, beta)
    jax.block_until_ready(y3)
    assert y3.shape == x3.shape

    # 3-D path, lane-dense length (also exercises the megacore tile-split logic).
    x3b = jax.random.normal(k3, (batch, num_features, 1024), jnp.float32)
    y3b = layer_norm_module(x3b, gamma, beta)
    jax.block_until_ready(y3b)
    assert y3b.shape == x3b.shape

    # 2-D path, tiny batch (falls back to the plain rows kernel): [batch, channels]
    x2 = jax.random.normal(k2, (batch, num_features), jnp.float32)
    y2 = layer_norm_module(x2, gamma, beta)
    jax.block_until_ready(y2)
    assert y2.shape == x2.shape

    # 2-D path, packable batch (lane-dense packed kernel): [256, channels]
    x2p = jax.random.normal(k4, (256, num_features), jnp.float32)
    y2p = layer_norm_module(x2p, gamma, beta)
    jax.block_until_ready(y2p)
    assert y2p.shape == x2p.shape

    # Correctness checks against a pure-JAX reference.
    assert jnp.max(jnp.abs(y3 - _reference(x3, gamma, beta))) < 1e-4
    assert jnp.max(jnp.abs(y3b - _reference(x3b, gamma, beta))) < 1e-4
    assert jnp.max(jnp.abs(y2 - _reference(x2, gamma, beta))) < 1e-4
    assert jnp.max(jnp.abs(y2p - _reference(x2p, gamma, beta))) < 1e-4

    print("KERNEL_OK")
</pallas_src>

<mosaic_0001>
module attributes {stable_mosaic.version = 11 : i64} {
  func.func @_ln_ncl_kernel(%arg0: i32, %arg1: i32, %arg2: memref<1x32x16xf32, #tpu.memory_space<vmem>>, %arg3: memref<32x1xf32, #tpu.memory_space<vmem>>, %arg4: memref<32x1xf32, #tpu.memory_space<vmem>>, %arg5: memref<1x32x16xf32, #tpu.memory_space<vmem>>) attributes {dimension_semantics = [#tpu.dimension_semantics<parallel>, #tpu.dimension_semantics<parallel>], iteration_bounds = array<i64: 2, 1>, scalar_prefetch = 0 : i64, scratch_operands = 0 : i64, tpu.core_type = #tpu.core_type<tc>, window_params = [{transform_indices = @transform_0, window_bounds = array<i64: 1, 32, 16>}, {pipeline_mode = #tpu.pipeline_mode<synchronous>, transform_indices = @transform_1, window_bounds = array<i64: 32, 1>}, {pipeline_mode = #tpu.pipeline_mode<synchronous>, transform_indices = @transform_2, window_bounds = array<i64: 32, 1>}, {transform_indices = @transform_3, window_bounds = array<i64: 1, 32, 16>}]} {
    %c0 = arith.constant 0 : index
    %c0_0 = arith.constant 0 : index
    %c0_1 = arith.constant 0 : index
    %0 = vector.load %arg2[%c0, %c0_0, %c0_1] : memref<1x32x16xf32, #tpu.memory_space<vmem>>, vector<1x32x16xf32>
    %cst = arith.constant dense<0.000000e+00> : vector<1x16xf32>
    %1 = vector.multi_reduction <add>, %0, %cst [1] : vector<1x32x16xf32> to vector<1x16xf32>
    %2 = vector.shape_cast %1 : vector<1x16xf32> to vector<1x1x16xf32>
    %cst_2 = arith.constant 3.200000e+01 : f32
    %3 = vector.broadcast %cst_2 : f32 to vector<1x1x16xf32>
    %4 = arith.divf %2, %3 : vector<1x1x16xf32>
    %5 = vector.broadcast %4 : vector<1x1x16xf32> to vector<1x32x16xf32>
    %6 = arith.subf %0, %5 : vector<1x32x16xf32>
    %7 = arith.mulf %6, %6 : vector<1x32x16xf32>
    %cst_3 = arith.constant dense<0.000000e+00> : vector<1x16xf32>
    %8 = vector.multi_reduction <add>, %7, %cst_3 [1] : vector<1x32x16xf32> to vector<1x16xf32>
    %9 = vector.shape_cast %8 : vector<1x16xf32> to vector<1x1x16xf32>
    %cst_4 = arith.constant 3.200000e+01 : f32
    %10 = vector.broadcast %cst_4 : f32 to vector<1x1x16xf32>
    %11 = arith.divf %9, %10 : vector<1x1x16xf32>
    %cst_5 = arith.constant 9.99999974E-6 : f32
    %12 = vector.broadcast %cst_5 : f32 to vector<1x1x16xf32>
    %13 = arith.addf %11, %12 : vector<1x1x16xf32>
    %14 = math.rsqrt %13 : vector<1x1x16xf32>
    %15 = vector.broadcast %14 : vector<1x1x16xf32> to vector<1x32x16xf32>
    %16 = arith.mulf %6, %15 : vector<1x32x16xf32>
    %c0_6 = arith.constant 0 : index
    %c0_7 = arith.constant 0 : index
    %17 = vector.load %arg3[%c0_6, %c0_7] : memref<32x1xf32, #tpu.memory_space<vmem>>, vector<32x1xf32>
    %18 = vector.shape_cast %17 : vector<32x1xf32> to vector<1x32x1xf32>
    %19 = vector.broadcast %18 : vector<1x32x1xf32> to vector<1x32x16xf32>
    %20 = arith.mulf %16, %19 : vector<1x32x16xf32>
    %c0_8 = arith.constant 0 : index
    %c0_9 = arith.constant 0 : index
    %21 = vector.load %arg4[%c0_8, %c0_9] : memref<32x1xf32, #tpu.memory_space<vmem>>, vector<32x1xf32>
    %22 = vector.shape_cast %21 : vector<32x1xf32> to vector<1x32x1xf32>
    %23 = vector.broadcast %22 : vector<1x32x1xf32> to vector<1x32x16xf32>
    %24 = arith.addf %20, %23 : vector<1x32x16xf32>
    %c0_10 = arith.constant 0 : index
    %c0_11 = arith.constant 0 : index
    %c0_12 = arith.constant 0 : index
    %25 = vector.load %arg5[%c0_10, %c0_11, %c0_12] : memref<1x32x16xf32, #tpu.memory_space<vmem>>, vector<1x32x16xf32>
    tpu.vector_store %arg5[%c0_10, %c0_11, %c0_12], %24 {strides = array<i32>} : memref<1x32x16xf32, #tpu.memory_space<vmem>>, vector<1x32x16xf32>,
    return
  }
  func.func @transform_0(%arg0: i32, %arg1: i32) -> (i32, i32, i32) {
    %c0_i32 = arith.constant 0 : i32
    %c0_i32_0 = arith.constant 0 : i32
    return %arg0, %c0_i32, %arg1 : i32, i32, i32
  }
  func.func @transform_1(%arg0: i32, %arg1: i32) -> (i32, i32) {
    %c0_i32 = arith.constant 0 : i32
    %c0_i32_0 = arith.constant 0 : i32
    %c0_i32_1 = arith.constant 0 : i32
    return %c0_i32, %c0_i32_0 : i32, i32
  }
  func.func @transform_2(%arg0: i32, %arg1: i32) -> (i32, i32) {
    %c0_i32 = arith.constant 0 : i32
    %c0_i32_0 = arith.constant 0 : i32
    %c0_i32_1 = arith.constant 0 : i32
    return %c0_i32, %c0_i32_0 : i32, i32
  }
  func.func @transform_3(%arg0: i32, %arg1: i32) -> (i32, i32, i32) {
    %c0_i32 = arith.constant 0 : i32
    %c0_i32_0 = arith.constant 0 : i32
    return %arg0, %c0_i32, %arg1 : i32, i32, i32
  }
}

</mosaic_0001>

<bundles_post_ra>
// kernel: layer_norm_module.1
= control target key start
LH: loop header
LB: loop body
LE: loop exit
PB: predicated region body
PF: predicated region fallthrough
CT: control target
= control target key end

     0   :  { %s480_s12 = smov 0   ;;  %s482_s13 = smov 0   ;;  %s556_s0 = inlined_call_operand.vmem [shape: f32[2,32,16], index: 0, kind: input, shape index: {}]   ;;  %s557_s1 = inlined_call_operand.vmem [shape: f32[32,1], index: 1, kind: input, shape index: {}]   ;;  %s558_s2 = inlined_call_operand.vmem [shape: f32[32,1], index: 2, kind: input, shape index: {}]   ;;  %s559_s3 = inlined_call_operand.vmem [shape: f32[2,32,16], index: 3, kind: output, shape index: {}]  }
   0x1   :  { %s484_s14 = smov 0  }
   0x2 LB: > { %s25_s15 = sadd.s32 1, %s453_s13  ;;  %p397_p0 = scmp.ge.s32.totalorder %s457_s14, 1  ;;  %s457_s14 = sphi %s484_s14, %s13_s14   ;;  %s453_s13 = sphi %s482_s13, %s561_s13   ;;  %s449_s12 = sphi %s480_s12, %s560_s12  }
   0x3   : > { %p27_p1 = scmp.ge.s32.totalorder %s25_s15, 2  ;;  %p156_p2 = scmp.lt.s32.totalorder %s457_s14, 3 }
   0x5   : > { %s563_s15 = smov (%p27_p1, %s25_s15), 0  ;;  %p157_p3 = pnand %p397_p0, %p156_p2 }
   0x6   : > { %p186_p4 = scmp.lt.s32.totalorder (!%p157_p3), %s449_s12, 1 }
   0x7   : > { %160 = sbr.rel (%p157_p3) target bundleno = 153 (0x99), region = 32 }
   0xc   : > { %v252_v0 = vld [vmem:[%s557_s1 + $0x10] sm:$0xff]  ;;  %v250_v1 = vld [vmem:[%s557_s1] sm:$0xff]  ;;  %v459_v2 = vmov 0   ;;  %s565_s12 = smov (!%p186_p4, %s449_s12), 1  ;;  %v253_v3 = vld [vmem:[%s557_s1 + $0x18] sm:$0xff]  ;;  %vm206_vm0 = vcmask 130048  }
   0xd   : > { %432 = vset.pattern.permute.xlu1 %v459_v2  ;;  %431 = vset.pattern.permute.xlu0 %v459_v2  ;;  %v251_v4 = vld [vmem:[%s557_s1 + $0x8] sm:$0xff]  ;;  %s404_s24 = sshll.u32 %s565_s12, 5  ;;  %v278_v6 = vld [vmem:[%s558_s2] sm:$0xff]  ;;  %v281_v7 = vld [vmem:[%s558_s2 + $0x18] sm:$0xff] }
   0xe   : > { %266 = vperm.xlu1 %432, %v252_v0   ;;  %256 = vperm.xlu0 %431, %v250_v1   ;;  %v279_v5 = vld [vmem:[%s558_s2 + $0x8] sm:$0xff]  ;;  %s193_s4 = scalar_lea.vmem %s556_s0, %s404_s24  ;;  %v280_v8 = vld [vmem:[%s558_s2 + $0x10] sm:$0xff]  ;;  %s201_s11 = scalar_lea.vmem %s559_s3, %s404_s24 }
   0xf   : > { %v202_v9 = vld [vmem:[%s193_s4] sm:$0xff]  ;;  %v203_v10 = vld [vmem:[%s193_s4 + $0x8] sm:$0xff]  ;;  %v204_v13 = vld [vmem:[%s193_s4 + $0x10] sm:$0xff] }
  0x10   : > { %v207_v11 = vsel %vm206_vm0, %v202_v9, 0.0  ;;  %v208_v12 = vsel %vm206_vm0, %v203_v10, 0.0  ;;  %v210_v15 = vsel %vm206_vm0, %v204_v13, 0.0  ;;  %v205_v16 = vld [vmem:[%s193_s4 + $0x18] sm:$0xff] }
  0x11   : > { %v209_v14 = vadd.f32 %v208_v12, %v207_v11  ;;  %v212_v18 = vsel %vm206_vm0, %v205_v16, 0.0 }
  0x12   : > { %271 = vperm.xlu1 %432, %v253_v3   ;;  %261 = vperm.xlu0 %431, %v251_v4  }
  0x13   : > { %v211_v17 = vadd.f32 %v210_v15, %v209_v14 }
  0x15   : > { %v213_v19 = vadd.f32 %v212_v18, %v211_v17 }
  0x16   : > { %289 = vperm.xlu1 %432, %v279_v5   ;;  %284 = vperm.xlu0 %431, %v278_v6  }
  0x17   : > { %v214_v20 = vrot.slane %v213_v19, 4 }
  0x19   : > { %v215_v21 = vadd.f32 %v214_v20, %v213_v19 }
  0x1a   : > { %299 = vperm.xlu1 %432, %v281_v7   ;;  %294 = vperm.xlu0 %431, %v280_v8  }
  0x1b   : > { %v216_v22 = vrot.slane %v215_v21, 2 }
  0x1d   : > { %v217_v23 = vadd.f32 %v216_v22, %v215_v21 }
  0x1f   : > { %v218_v24 = vrot.slane %v217_v23, 1 }
  0x21   : > { %v219_v25 = vadd.f32 %v218_v24, %v217_v23 }
  0x23   : > { %v221_v26 = vmul.f32 0.03125, %v219_v25 }
  0x25   : > { %v222_v27 = vsub.f32 %v202_v9, %v221_v26  ;;  %v223_v28 = vsub.f32 %v203_v10, %v221_v26  ;;  %v224_v29 = vsub.f32 %v204_v13, %v221_v26  ;;  %v225_v32 = vsub.f32 %v205_v16, %v221_v26 }
  0x27   : > { %v226_v30 = vmul.f32 %v222_v27, %v222_v27  ;;  %v227_v31 = vmul.f32 %v223_v28, %v223_v28  ;;  %v228_v33 = vmul.f32 %v224_v29, %v224_v29  ;;  %v229_v37 = vmul.f32 %v225_v32, %v225_v32 }
  0x29   : > { %v230_v34 = vsel %vm206_vm0, %v226_v30, 0.0  ;;  %v231_v35 = vsel %vm206_vm0, %v227_v31, 0.0  ;;  %v233_v38 = vsel %vm206_vm0, %v228_v33, 0.0  ;;  %v235_v40 = vsel %vm206_vm0, %v229_v37, 0.0 }
  0x2a   : > { %v232_v36 = vadd.f32 %v231_v35, %v230_v34 }
  0x2c   : > { %v234_v39 = vadd.f32 %v233_v38, %v232_v36 }
  0x2e   : > { %v236_v41 = vadd.f32 %v235_v40, %v234_v39 }
  0x30   : > { %v237_v42 = vrot.slane %v236_v41, 4 }
  0x32   : > { %v238_v43 = vadd.f32 %v237_v42, %v236_v41 }
  0x34   : > { %v239_v44 = vrot.slane %v238_v43, 2 }
  0x36   : > { %v240_v45 = vadd.f32 %v239_v44, %v238_v43 }
  0x38   : > { %v241_v46 = vrot.slane %v240_v45, 1 }
  0x3a   : > { %v242_v47 = vadd.f32 %v241_v46, %v240_v45 }
  0x3c   : > { %v243_v48 = vmul.f32 0.03125, %v242_v47 }
  0x3e   : > { %v244_v49 = vadd.f32 1e-05, %v243_v48 }
  0x40   : > { %433 = vrsqrt.f32 %v244_v49 }
  0x4d   : > { %v434_v50 = vpop.eup %433 }
  0x4e   : > { %v246_v53 = vmul.f32 %v434_v50, %v222_v27  ;;  %v247_v54 = vmul.f32 %v434_v50, %v223_v28  ;;  %v248_v57 = vmul.f32 %v434_v50, %v224_v29  ;;  %v249_v59 = vmul.f32 %v434_v50, %v225_v32 }
  0x89   : > { %v267_v51 = vpop.permute.xlu1 %266  ;;  %v257_v52 = vpop.permute.xlu0 %256 }
  0x8a   : > { %v274_v58 = vmul.f32 %v257_v52, %v246_v53  ;;  %v276_v1 = vmul.f32 %v267_v51, %v248_v57 }
  0x8d   : > { %v272_v55 = vpop.permute.xlu1 %271  ;;  %v262_v56 = vpop.permute.xlu0 %261 }
  0x8e   : > { %v275_v60 = vmul.f32 %v262_v56, %v247_v54  ;;  %v277_v2 = vmul.f32 %v272_v55, %v249_v59 }
  0x91   : > { %v290_v61 = vpop.permute.xlu1 %289  ;;  %v285_v62 = vpop.permute.xlu0 %284 }
  0x92   : > { %v303_v63 = vadd.f32 %v290_v61, %v275_v60  ;;  %v302_v0 = vadd.f32 %v285_v62, %v274_v58 }
  0x94   : > { %307 = vst.msk [vmem:[%s201_s11 + $0x8] sm:$0xff] %vm206_vm0, %v303_v63  ;;  %306 = vst.msk [vmem:[%s201_s11] sm:$0xff] %vm206_vm0, %v302_v0 }
  0x95   : > { %v300_v3 = vpop.permute.xlu1 %299  ;;  %v295_v4 = vpop.permute.xlu0 %294 }
  0x96   : > { %v305_v5 = vadd.f32 %v300_v3, %v277_v2  ;;  %v304_v6 = vadd.f32 %v295_v4, %v276_v1 }
  0x98   : > { %309 = vst.msk [vmem:[%s201_s11 + $0x18] sm:$0xff] %vm206_vm0, %v305_v5  ;;  %308 = vst.msk [vmem:[%s201_s11 + $0x10] sm:$0xff] %vm206_vm0, %v304_v6 }
  0x99 PF: > { %s13_s14 = sadd.s32 1, %s457_s14   ;;  %s560_s12 = smov %s453_s13 }
  0x9a   : > { %p10_p5 = scmp.ge.s32.totalorder %s13_s14, 4   ;;  %s561_s13 = smov %s563_s15 }
  0x9c   :  { %12 = sbr.rel (!%p10_p5) target bundleno = 2 (0x2), region = 62 }

</bundles_post_ra>
